<compile_context>
chip_gen: v7x
topology: tpu7x:2x2x1
jax: 0.10.0
libtpu: 0.0.40
codegen_flags: <defaults>
</compile_context>

<pallas_src>
import jax
import jax.numpy as jnp
from jax.experimental import pallas as pl
from jax.experimental.pallas import tpu as pltpu


def _h_swish(y):
    return y * (jnp.clip(y + 3.0, 0.0, 6.0) * (1.0 / 6.0))


def _sigmoid(z):
    # Explicit form (exp goes to the EUP); avoids relying on logistic lowering.
    return 1.0 / (1.0 + jnp.exp(-z))


def _gates(pool_h, pool_w, w1, b1, wh, bh, ww, bw):
    """Pooled rows (C,H)/(C,W) -> sigmoid gates (oup,H), (oup,W), all f32."""
    # Folded eval-mode BN makes conv1 a per-output-channel affine, so applying
    # it to each pooled half separately equals concat -> conv1 -> BN -> split.
    y_h = _h_swish(jnp.dot(w1, pool_h, preferred_element_type=jnp.float32) + b1)
    y_w = _h_swish(jnp.dot(w1, pool_w, preferred_element_type=jnp.float32) + b1)
    a_h = _sigmoid(jnp.dot(wh, y_h, preferred_element_type=jnp.float32) + bh)
    a_w = _sigmoid(jnp.dot(ww, y_w, preferred_element_type=jnp.float32) + bw)
    return a_h, a_w


def _fused_kernel(x_ref, w1_ref, b1_ref, wh_ref, bh_ref, ww_ref, bw_ref, o_ref):
    """Single pass per batch element: pools -> gates -> broadcast multiply."""
    x = x_ref[...].astype(jnp.float32)                     # (C, H, W)
    pool_h = jnp.mean(x, axis=2)                           # (C, H)  avg over W
    pool_w = jnp.mean(x, axis=1)                           # (C, W)  avg over H
    a_h, a_w = _gates(pool_h, pool_w, w1_ref[...], b1_ref[...],
                      wh_ref[...], bh_ref[...], ww_ref[...], bw_ref[...])
    o_ref[...] = (x * a_h[:, :, None] * a_w[:, None, :]).astype(o_ref.dtype)


def _attn_branch_kernel(x_ref, w1_ref, b1_ref, wh_ref, bh_ref, ww_ref, bw_ref,
                        ah_ref, aw_ref):
    """Fallback kernel 1: pools -> gates only (writes tiny a_h / a_w)."""
    x = x_ref[...].astype(jnp.float32)                     # (C, H, W)
    pool_h = jnp.mean(x, axis=2)                           # (C, H)
    pool_w = jnp.mean(x, axis=1)                           # (C, W)
    a_h, a_w = _gates(pool_h, pool_w, w1_ref[...], b1_ref[...],
                      wh_ref[...], bh_ref[...], ww_ref[...], bw_ref[...])
    ah_ref[...] = a_h.astype(ah_ref.dtype)                 # (oup, H)
    aw_ref[...] = a_w.astype(aw_ref.dtype)                 # (oup, W)


def _gate_kernel(x_ref, ah_ref, aw_ref, o_ref):
    """Fallback kernel 2: out = x * a_h[:, :, None] * a_w[:, None, :]."""
    x = x_ref[...].astype(jnp.float32)                     # (tc, H, W)
    a_h = ah_ref[...].astype(jnp.float32)                  # (tc, H)
    a_w = aw_ref[...].astype(jnp.float32)                  # (tc, W)
    o_ref[...] = (x * a_h[:, :, None] * a_w[:, None, :]).astype(o_ref.dtype)


def coord_att(x, params, *, eps=1e-5, gate_block_bytes=2 << 20,
              fused_vmem_budget=40 << 20):
    """CoordAtt forward. x: (N, C, H, W). params: dict of conv/BN tensors."""
    N, C, H, W = x.shape
    w1, b1 = params["conv1_w"], params["conv1_b"]          # (mip, C), (mip,)
    gamma, beta = params["bn_gamma"], params["bn_beta"]    # (mip,)
    mean, var = params["bn_mean"], params["bn_var"]        # (mip,)
    wh, bh = params["convh_w"], params["convh_b"]          # (oup, mip), (oup,)
    ww, bw = params["convw_w"], params["convw_b"]          # (oup, mip), (oup,)
    mip, oup = w1.shape[0], wh.shape[0]
    assert oup == C, "CoordAtt gating requires oup == inp channels"

    f32 = jnp.float32
    # Fold eval-mode BatchNorm exactly into conv1:  BN(W x + b) = W' x + b'.
    scale = gamma.astype(f32) * jax.lax.rsqrt(var.astype(f32) + eps)
    w1f = w1.astype(f32) * scale[:, None]
    b1f = (b1.astype(f32) * scale + beta.astype(f32) - mean.astype(f32) * scale)[:, None]
    whf, bhf = wh.astype(f32), bh.astype(f32)[:, None]
    wwf, bwf = ww.astype(f32), bw.astype(f32)[:, None]

    weight_specs = [
        pl.BlockSpec((mip, C), lambda n: (0, 0)),
        pl.BlockSpec((mip, 1), lambda n: (0, 0)),
        pl.BlockSpec((oup, mip), lambda n: (0, 0)),
        pl.BlockSpec((oup, 1), lambda n: (0, 0)),
        pl.BlockSpec((oup, mip), lambda n: (0, 0)),
        pl.BlockSpec((oup, 1), lambda n: (0, 0)),
    ]

    itemsize = jnp.dtype(x.dtype).itemsize
    slab_elems = C * H * W
    # Double-buffered input + output blocks, plus ~2 f32 compute temporaries.
    fused_need = 4 * slab_elems * itemsize + 2 * slab_elems * 4

    # ---- fused single-pass path: x read from HBM exactly once -------------
    if fused_need <= fused_vmem_budget:
        vmem_limit = min(max(32 << 20, fused_need + (8 << 20)), 56 << 20)
        return pl.pallas_call(
            _fused_kernel,
            out_shape=jax.ShapeDtypeStruct((N, C, H, W), x.dtype),
            grid_spec=pltpu.PrefetchScalarGridSpec(
                num_scalar_prefetch=0,
                grid=(N,),
                in_specs=[pl.BlockSpec((None, C, H, W), lambda n: (n, 0, 0, 0))]
                         + weight_specs,
                out_specs=pl.BlockSpec((None, C, H, W), lambda n: (n, 0, 0, 0)),
            ),
            compiler_params=pltpu.CompilerParams(
                dimension_semantics=("parallel",),
                vmem_limit_bytes=vmem_limit),
        )(x, w1f, b1f, whf, bhf, wwf, bwf)

    # ---- fallback: two-pass (attention branch, then tiled gating) ---------
    # TODO(synk): if a single (C, H, W) slab does not fit in VMEM at all,
    # kernel 1 would additionally need H-tiling with pooling accumulators.
    branch_need = 2 * slab_elems * itemsize + slab_elems * 4
    branch_vmem = min(max(32 << 20, branch_need + (8 << 20)), 56 << 20)

    a_h, a_w = pl.pallas_call(
        _attn_branch_kernel,
        out_shape=(jax.ShapeDtypeStruct((N, oup, H), x.dtype),
                   jax.ShapeDtypeStruct((N, oup, W), x.dtype)),
        grid_spec=pltpu.PrefetchScalarGridSpec(
            num_scalar_prefetch=0,
            grid=(N,),
            in_specs=[pl.BlockSpec((None, C, H, W), lambda n: (n, 0, 0, 0))]
                     + weight_specs,
            out_specs=[
                pl.BlockSpec((None, oup, H), lambda n: (n, 0, 0)),
                pl.BlockSpec((None, oup, W), lambda n: (n, 0, 0)),
            ],
        ),
        compiler_params=pltpu.CompilerParams(
            dimension_semantics=("parallel",),
            vmem_limit_bytes=branch_vmem),
    )(x, w1f, b1f, whf, bhf, wwf, bwf)

    # Broadcast gating multiply over the full NCHW tensor, tiled over channels.
    per_chan = H * W * itemsize
    sub = max(8, 32 // itemsize)          # sublane multiple: 8 f32, 16 bf16
    tc = max(1, gate_block_bytes // per_chan)
    if tc >= C:
        tc = C                            # whole channel dim fits in one tile
    else:
        tc = max(sub, (tc // sub) * sub)  # keep (8,128)-legal sublane blocks
    grid = (N, pl.cdiv(C, tc))            # many steps -> both v7x TCs busy

    out = pl.pallas_call(
        _gate_kernel,
        out_shape=jax.ShapeDtypeStruct((N, C, H, W), x.dtype),
        grid_spec=pltpu.PrefetchScalarGridSpec(
            num_scalar_prefetch=0,
            grid=grid,
            in_specs=[
                pl.BlockSpec((None, tc, H, W), lambda n, ci: (n, ci, 0, 0)),
                pl.BlockSpec((None, tc, H), lambda n, ci: (n, ci, 0)),
                pl.BlockSpec((None, tc, W), lambda n, ci: (n, ci, 0)),
            ],
            out_specs=pl.BlockSpec((None, tc, H, W),
                                   lambda n, ci: (n, ci, 0, 0)),
        ),
        compiler_params=pltpu.CompilerParams(
            dimension_semantics=("parallel", "parallel")),
    )(x, a_h, a_w)
    return out


def coord_att_ref(x, params, *, eps=1e-5):
    """Pure-JAX reference mirroring the PyTorch forward (eval-mode BN)."""
    xf = x.astype(jnp.float32)
    n, c, h, w = x.shape
    x_h = jnp.mean(xf, axis=3)                               # (n, c, h)
    x_w = jnp.mean(xf, axis=2)                               # (n, c, w)
    y = jnp.concatenate([x_h, x_w], axis=2)                  # (n, c, h+w)
    y = jnp.einsum("oc,ncl->nol", params["conv1_w"], y) + params["conv1_b"][None, :, None]
    y = ((y - params["bn_mean"][None, :, None])
         * jax.lax.rsqrt(params["bn_var"][None, :, None] + eps)
         * params["bn_gamma"][None, :, None] + params["bn_beta"][None, :, None])
    y = y * (jnp.clip(y + 3.0, 0.0, 6.0) / 6.0)              # h_swish
    yh, yw = y[:, :, :h], y[:, :, h:]
    a_h = jax.nn.sigmoid(jnp.einsum("oc,ncl->nol", params["convh_w"], yh)
                         + params["convh_b"][None, :, None])
    a_w = jax.nn.sigmoid(jnp.einsum("oc,ncl->nol", params["convw_w"], yw)
                         + params["convw_b"][None, :, None])
    return (xf * a_h[:, :, :, None] * a_w[:, :, None, :]).astype(x.dtype)


if __name__ == "__main__":
    key = jax.random.PRNGKey(0)
    N, C, H, W = 2, 4, 16, 16
    reduction = 32
    mip = max(8, C // reduction)
    oup = C

    ks = jax.random.split(key, 11)
    x = jax.random.normal(ks[0], (N, C, H, W), dtype=jnp.float32) * 2.0
    params = dict(
        conv1_w=0.5 * jax.random.normal(ks[1], (mip, C), jnp.float32),
        conv1_b=0.1 * jax.random.normal(ks[2], (mip,), jnp.float32),
        bn_gamma=1.0 + 0.1 * jax.random.normal(ks[3], (mip,), jnp.float32),
        bn_beta=0.1 * jax.random.normal(ks[4], (mip,), jnp.float32),
        bn_mean=0.1 * jax.random.normal(ks[5], (mip,), jnp.float32),
        bn_var=jnp.abs(jax.random.normal(ks[6], (mip,), jnp.float32)) + 0.5,
        convh_w=0.5 * jax.random.normal(ks[7], (oup, mip), jnp.float32),
        convh_b=0.1 * jax.random.normal(ks[8], (oup,), jnp.float32),
        convw_w=0.5 * jax.random.normal(ks[9], (oup, mip), jnp.float32),
        convw_b=0.1 * jax.random.normal(ks[10], (oup,), jnp.float32),
    )

    ref = coord_att_ref(x, params)

    # Default (fused single-pass) path.
    out = jax.block_until_ready(coord_att(x, params))
    assert out.shape == x.shape and out.dtype == x.dtype
    assert jnp.allclose(out, ref, atol=1e-4, rtol=1e-4), float(
        jnp.max(jnp.abs(out.astype(jnp.float32) - ref.astype(jnp.float32))))

    # Also exercise the two-pass fallback path (forced via a tiny budget).
    out_fb = jax.block_until_ready(coord_att(x, params, fused_vmem_budget=0))
    assert jnp.allclose(out_fb, ref, atol=1e-4, rtol=1e-4), float(
        jnp.max(jnp.abs(out_fb.astype(jnp.float32) - ref.astype(jnp.float32))))

    print("KERNEL_OK")
</pallas_src>

<mosaic_0001>
module attributes {stable_mosaic.version = 11 : i64} {
  func.func @_fused_kernel(%arg0: i32, %arg1: memref<1x4x16x16xf32, #tpu.memory_space<vmem>>, %arg2: memref<8x4xf32, #tpu.memory_space<vmem>>, %arg3: memref<8x1xf32, #tpu.memory_space<vmem>>, %arg4: memref<4x8xf32, #tpu.memory_space<vmem>>, %arg5: memref<4x1xf32, #tpu.memory_space<vmem>>, %arg6: memref<4x8xf32, #tpu.memory_space<vmem>>, %arg7: memref<4x1xf32, #tpu.memory_space<vmem>>, %arg8: memref<1x4x16x16xf32, #tpu.memory_space<vmem>>) attributes {dimension_semantics = [#tpu.dimension_semantics<parallel>], iteration_bounds = array<i64: 2>, scalar_prefetch = 0 : i64, scratch_operands = 0 : i64, tpu.core_type = #tpu.core_type<tc>, window_params = [{transform_indices = @transform_0, window_bounds = array<i64: 1, 4, 16, 16>}, {pipeline_mode = #tpu.pipeline_mode<synchronous>, transform_indices = @transform_1, window_bounds = array<i64: 8, 4>}, {pipeline_mode = #tpu.pipeline_mode<synchronous>, transform_indices = @transform_2, window_bounds = array<i64: 8, 1>}, {pipeline_mode = #tpu.pipeline_mode<synchronous>, transform_indices = @transform_3, window_bounds = array<i64: 4, 8>}, {pipeline_mode = #tpu.pipeline_mode<synchronous>, transform_indices = @transform_4, window_bounds = array<i64: 4, 1>}, {pipeline_mode = #tpu.pipeline_mode<synchronous>, transform_indices = @transform_5, window_bounds = array<i64: 4, 8>}, {pipeline_mode = #tpu.pipeline_mode<synchronous>, transform_indices = @transform_6, window_bounds = array<i64: 4, 1>}, {transform_indices = @transform_7, window_bounds = array<i64: 1, 4, 16, 16>}]} {
    %c0 = arith.constant 0 : index
    %c0_0 = arith.constant 0 : index
    %c0_1 = arith.constant 0 : index
    %c0_2 = arith.constant 0 : index
    %0 = vector.load %arg1[%c0, %c0_0, %c0_1, %c0_2] : memref<1x4x16x16xf32, #tpu.memory_space<vmem>>, vector<1x4x16x16xf32>
    %1 = vector.shape_cast %0 : vector<1x4x16x16xf32> to vector<4x16x16xf32>
    %cst = arith.constant dense<0.000000e+00> : vector<4x16xf32>
    %2 = vector.multi_reduction <add>, %1, %cst [2] : vector<4x16x16xf32> to vector<4x16xf32>
    %cst_3 = arith.constant 1.600000e+01 : f32
    %3 = vector.broadcast %cst_3 : f32 to vector<4x16xf32>
    %4 = arith.divf %2, %3 : vector<4x16xf32>
    %cst_4 = arith.constant dense<0.000000e+00> : vector<4x16xf32>
    %5 = vector.multi_reduction <add>, %1, %cst_4 [1] : vector<4x16x16xf32> to vector<4x16xf32>
    %cst_5 = arith.constant 1.600000e+01 : f32
    %6 = vector.broadcast %cst_5 : f32 to vector<4x16xf32>
    %7 = arith.divf %5, %6 : vector<4x16xf32>
    %c0_6 = arith.constant 0 : index
    %c0_7 = arith.constant 0 : index
    %8 = vector.load %arg2[%c0_6, %c0_7] : memref<8x4xf32, #tpu.memory_space<vmem>>, vector<8x4xf32>
    %c0_8 = arith.constant 0 : index
    %c0_9 = arith.constant 0 : index
    %9 = vector.load %arg3[%c0_8, %c0_9] : memref<8x1xf32, #tpu.memory_space<vmem>>, vector<8x1xf32>
    %c0_10 = arith.constant 0 : index
    %c0_11 = arith.constant 0 : index
    %10 = vector.load %arg4[%c0_10, %c0_11] : memref<4x8xf32, #tpu.memory_space<vmem>>, vector<4x8xf32>
    %c0_12 = arith.constant 0 : index
    %c0_13 = arith.constant 0 : index
    %11 = vector.load %arg5[%c0_12, %c0_13] : memref<4x1xf32, #tpu.memory_space<vmem>>, vector<4x1xf32>
    %c0_14 = arith.constant 0 : index
    %c0_15 = arith.constant 0 : index
    %12 = vector.load %arg6[%c0_14, %c0_15] : memref<4x8xf32, #tpu.memory_space<vmem>>, vector<4x8xf32>
    %c0_16 = arith.constant 0 : index
    %c0_17 = arith.constant 0 : index
    %13 = vector.load %arg7[%c0_16, %c0_17] : memref<4x1xf32, #tpu.memory_space<vmem>>, vector<4x1xf32>
    %cst_18 = arith.constant dense<0.000000e+00> : vector<8x16xf32>
    %14 = tpu.matmul %8, %4, %cst_18 {dimension_numbers = #tpu.dot_dimension_numbers<[1], [0], [0], [1], [0, 0, 1, 1], [], []>} : vector<8x4xf32>, vector<4x16xf32>, vector<8x16xf32> -> vector<8x16xf32>
    %15 = vector.broadcast %9 : vector<8x1xf32> to vector<8x16xf32>
    %16 = arith.addf %14, %15 : vector<8x16xf32>
    %cst_19 = arith.constant 3.000000e+00 : f32
    %17 = vector.broadcast %cst_19 : f32 to vector<8x16xf32>
    %18 = arith.addf %16, %17 : vector<8x16xf32>
    %cst_20 = arith.constant 0.000000e+00 : f32
    %cst_21 = arith.constant 6.000000e+00 : f32
    %19 = vector.broadcast %cst_20 : f32 to vector<8x16xf32>
    %20 = arith.maximumf %19, %18 : vector<8x16xf32>
    %21 = vector.broadcast %cst_21 : f32 to vector<8x16xf32>
    %22 = arith.minimumf %21, %20 : vector<8x16xf32>
    %cst_22 = arith.constant 0.166666672 : f32
    %23 = vector.broadcast %cst_22 : f32 to vector<8x16xf32>
    %24 = arith.mulf %22, %23 : vector<8x16xf32>
    %25 = arith.mulf %16, %24 : vector<8x16xf32>
    %cst_23 = arith.constant dense<0.000000e+00> : vector<8x16xf32>
    %26 = tpu.matmul %8, %7, %cst_23 {dimension_numbers = #tpu.dot_dimension_numbers<[1], [0], [0], [1], [0, 0, 1, 1], [], []>} : vector<8x4xf32>, vector<4x16xf32>, vector<8x16xf32> -> vector<8x16xf32>
    %27 = vector.broadcast %9 : vector<8x1xf32> to vector<8x16xf32>
    %28 = arith.addf %26, %27 : vector<8x16xf32>
    %cst_24 = arith.constant 3.000000e+00 : f32
    %29 = vector.broadcast %cst_24 : f32 to vector<8x16xf32>
    %30 = arith.addf %28, %29 : vector<8x16xf32>
    %cst_25 = arith.constant 0.000000e+00 : f32
    %cst_26 = arith.constant 6.000000e+00 : f32
    %31 = vector.broadcast %cst_25 : f32 to vector<8x16xf32>
    %32 = arith.maximumf %31, %30 : vector<8x16xf32>
    %33 = vector.broadcast %cst_26 : f32 to vector<8x16xf32>
    %34 = arith.minimumf %33, %32 : vector<8x16xf32>
    %cst_27 = arith.constant 0.166666672 : f32
    %35 = vector.broadcast %cst_27 : f32 to vector<8x16xf32>
    %36 = arith.mulf %34, %35 : vector<8x16xf32>
    %37 = arith.mulf %28, %36 : vector<8x16xf32>
    %cst_28 = arith.constant dense<0.000000e+00> : vector<4x16xf32>
    %38 = tpu.matmul %10, %25, %cst_28 {dimension_numbers = #tpu.dot_dimension_numbers<[1], [0], [0], [1], [0, 0, 1, 1], [], []>} : vector<4x8xf32>, vector<8x16xf32>, vector<4x16xf32> -> vector<4x16xf32>
    %39 = vector.broadcast %11 : vector<4x1xf32> to vector<4x16xf32>
    %40 = arith.addf %38, %39 : vector<4x16xf32>
    %cst_29 = arith.constant 0.000000e+00 : f32
    %41 = vector.broadcast %cst_29 : f32 to vector<4x16xf32>
    %42 = arith.subf %41, %40 : vector<4x16xf32>
    %43 = math.exp %42 : vector<4x16xf32>
    %cst_30 = arith.constant 1.000000e+00 : f32
    %44 = vector.broadcast %cst_30 : f32 to vector<4x16xf32>
    %45 = arith.addf %44, %43 : vector<4x16xf32>
    %cst_31 = arith.constant 1.000000e+00 : f32
    %46 = vector.broadcast %cst_31 : f32 to vector<4x16xf32>
    %47 = arith.divf %46, %45 : vector<4x16xf32>
    %cst_32 = arith.constant dense<0.000000e+00> : vector<4x16xf32>
    %48 = tpu.matmul %12, %37, %cst_32 {dimension_numbers = #tpu.dot_dimension_numbers<[1], [0], [0], [1], [0, 0, 1, 1], [], []>} : vector<4x8xf32>, vector<8x16xf32>, vector<4x16xf32> -> vector<4x16xf32>
    %49 = vector.broadcast %13 : vector<4x1xf32> to vector<4x16xf32>
    %50 = arith.addf %48, %49 : vector<4x16xf32>
    %cst_33 = arith.constant 0.000000e+00 : f32
    %51 = vector.broadcast %cst_33 : f32 to vector<4x16xf32>
    %52 = arith.subf %51, %50 : vector<4x16xf32>
    %53 = math.exp %52 : vector<4x16xf32>
    %cst_34 = arith.constant 1.000000e+00 : f32
    %54 = vector.broadcast %cst_34 : f32 to vector<4x16xf32>
    %55 = arith.addf %54, %53 : vector<4x16xf32>
    %cst_35 = arith.constant 1.000000e+00 : f32
    %56 = vector.broadcast %cst_35 : f32 to vector<4x16xf32>
    %57 = arith.divf %56, %55 : vector<4x16xf32>
    %58 = vector.shape_cast %47 : vector<4x16xf32> to vector<4x16x1xf32>
    %59 = vector.broadcast %58 : vector<4x16x1xf32> to vector<4x16x16xf32>
    %60 = arith.mulf %1, %59 : vector<4x16x16xf32>
    %61 = vector.shape_cast %57 : vector<4x16xf32> to vector<4x1x16xf32>
    %62 = vector.broadcast %61 : vector<4x1x16xf32> to vector<4x16x16xf32>
    %63 = arith.mulf %60, %62 : vector<4x16x16xf32>
    %c0_36 = arith.constant 0 : index
    %c0_37 = arith.constant 0 : index
    %c0_38 = arith.constant 0 : index
    %c0_39 = arith.constant 0 : index
    %64 = vector.load %arg8[%c0_36, %c0_37, %c0_38, %c0_39] : memref<1x4x16x16xf32, #tpu.memory_space<vmem>>, vector<1x4x16x16xf32>
    %65 = vector.shape_cast %64 : vector<1x4x16x16xf32> to vector<4x16x16xf32>
    %66 = vector.shape_cast %63 : vector<4x16x16xf32> to vector<1x4x16x16xf32>
    tpu.vector_store %arg8[%c0_36, %c0_37, %c0_38, %c0_39], %66 {strides = array<i32>} : memref<1x4x16x16xf32, #tpu.memory_space<vmem>>, vector<1x4x16x16xf32>,
    return
  }
  func.func @transform_0(%arg0: i32) -> (i32, i32, i32, i32) {
    %c0_i32 = arith.constant 0 : i32
    %c0_i32_0 = arith.constant 0 : i32
    %c0_i32_1 = arith.constant 0 : i32
    %c0_i32_2 = arith.constant 0 : i32
    return %arg0, %c0_i32, %c0_i32_0, %c0_i32_1 : i32, i32, i32, i32
  }
  func.func @transform_1(%arg0: i32) -> (i32, i32) {
    %c0_i32 = arith.constant 0 : i32
    %c0_i32_0 = arith.constant 0 : i32
    %c0_i32_1 = arith.constant 0 : i32
    return %c0_i32, %c0_i32_0 : i32, i32
  }
  func.func @transform_2(%arg0: i32) -> (i32, i32) {
    %c0_i32 = arith.constant 0 : i32
    %c0_i32_0 = arith.constant 0 : i32
    %c0_i32_1 = arith.constant 0 : i32
    return %c0_i32, %c0_i32_0 : i32, i32
  }
  func.func @transform_3(%arg0: i32) -> (i32, i32) {
    %c0_i32 = arith.constant 0 : i32
    %c0_i32_0 = arith.constant 0 : i32
    %c0_i32_1 = arith.constant 0 : i32
    return %c0_i32, %c0_i32_0 : i32, i32
  }
  func.func @transform_4(%arg0: i32) -> (i32, i32) {
    %c0_i32 = arith.constant 0 : i32
    %c0_i32_0 = arith.constant 0 : i32
    %c0_i32_1 = arith.constant 0 : i32
    return %c0_i32, %c0_i32_0 : i32, i32
  }
  func.func @transform_5(%arg0: i32) -> (i32, i32) {
    %c0_i32 = arith.constant 0 : i32
    %c0_i32_0 = arith.constant 0 : i32
    %c0_i32_1 = arith.constant 0 : i32
    return %c0_i32, %c0_i32_0 : i32, i32
  }
  func.func @transform_6(%arg0: i32) -> (i32, i32) {
    %c0_i32 = arith.constant 0 : i32
    %c0_i32_0 = arith.constant 0 : i32
    %c0_i32_1 = arith.constant 0 : i32
    return %c0_i32, %c0_i32_0 : i32, i32
  }
  func.func @transform_7(%arg0: i32) -> (i32, i32, i32, i32) {
    %c0_i32 = arith.constant 0 : i32
    %c0_i32_0 = arith.constant 0 : i32
    %c0_i32_1 = arith.constant 0 : i32
    %c0_i32_2 = arith.constant 0 : i32
    return %arg0, %c0_i32, %c0_i32_0, %c0_i32_1 : i32, i32, i32, i32
  }
}

</mosaic_0001>

<bundles_post_ra>
// kernel: tpu_custom_call.1
= control target key start
LH: loop header
LB: loop body
LE: loop exit
PB: predicated region body
PF: predicated region fallthrough
CT: control target
= control target key end

     0   :  { %12 = vsyncpa [#allocation3], 0  ;;  %s1501_s0 = inlined_call_operand.hbm [shape: f32[2,4,16,16], index: 0, kind: input, shape index: {}]   ;;  %s1502_s1 = inlined_call_operand.vmem [shape: f32[8,4], index: 1, kind: input, shape index: {}]   ;;  %s1503_s2 = inlined_call_operand.vmem [shape: f32[8,1], index: 2, kind: input, shape index: {}]   ;;  %s1504_s3 = inlined_call_operand.vmem [shape: f32[4,8], index: 3, kind: input, shape index: {}]   ;;  %s1505_s4 = inlined_call_operand.vmem [shape: f32[4,1], index: 4, kind: input, shape index: {}]   ;;  %s1506_s5 = inlined_call_operand.vmem [shape: f32[4,8], index: 5, kind: input, shape index: {}]   ;;  %s1507_s6 = inlined_call_operand.vmem [shape: f32[4,1], index: 6, kind: input, shape index: {}]   ;;  %s1508_s7 = inlined_call_operand.hbm [shape: f32[2,4,16,16], index: 7, kind: output, shape index: {}]  }
   0x1   :  { %14 = vsyncpa [#allocation3 + $0x1], 0 }
   0x2   :  { %15 = vsyncpa [#allocation4], 0 }
   0x3   :  { %17 = vsyncpa [#allocation4 + $0x1], 0  ;;  %s1233_s24 = smov 0   ;;  %s1235_s25 = smov 0  }
   0x4   :  { %s1237_s26 = smov 0   ;;  %s1239_s27 = smov 0  }
   0x5 LB: > { %s1254_s28 = sadd.s32 4294967295, %s1181_s27   ;;  %s971_s29 = sadd.s32 4294967294, %s1181_s27   ;;  %s1181_s27 = sphi %s1239_s27, %s1521_s27   ;;  %s1177_s26 = sphi %s1237_s26, %s1520_s26   ;;  %s1173_s25 = sphi %s1235_s25, %s1519_s25   ;;  %s1169_s24 = sphi %s1233_s24, %s1518_s24  }
   0x6   : > { %s1258_s30 = sadd.s32 1, %s1181_s27   ;;  %s30_s8 = sadd.s32 1, %s1177_s26 }
   0x7   : > { %s27_s9 = ssub.s32 %s1181_s27, %s1258_s30  ;;  %p37_p0 = scmp.ne.s32.totalorder %s1177_s26, %s1173_s25 }
   0x8   : > { %p28_p1 = scmp.eq.s32.totalorder %s27_s9, 0  ;;  %p38_p2 = scmp.eq.s32.totalorder %s1181_s27, 0 }
   0x9   : > { %p43_p3 = scmp.ne.s32.totalorder %s1173_s25, %s1169_s24  ;;  %p44_p4 = scmp.eq.s32.totalorder %s1254_s28, 0 }
   0xa   : > { %s1270_s10 = scalar_select %p28_p1, %s1177_s26, %s30_s8  }
   0xb   : > { %p1272_p5 = por %p38_p2, %p37_p0  ;;  %p1276_p6 = por %p44_p4, %p43_p3 }
   0xc   : > { %p193_p7 = scmp.eq.s32.totalorder %s1254_s28, 1  ;;  %p199_p8 = scmp.eq.s32.totalorder %s971_s29, 1 }
   0xd   : > { %p1033_p10 = scmp.lt.s32.totalorder %s1181_s27, 2  ;;  %s237_s15 = sand.u32 1, %s1177_s26  }
   0xe   : > { %p1283_p11 = por %p193_p7, %p37_p0  ;;  %p1287_p12 = por %p199_p8, %p43_p3 }
   0xf   : > { %s991_s16 = sshll.u32 %s1181_s27, 10  ;;  %s974_s17 = sshll.u32 %s237_s15, 6 }
  0x10   : > { %s1512_s13 = scalar_select %p1283_p11, 1, 0 }
  0x11   : > { %s1513_s14 = scalar_select %p1287_p12, 1, 0 }
  0x12   : > { %s1296_s20 = scalar_lea.hbm %s1501_s0, %s991_s16  ;;  %s241_s21 = scalar_lea.vmem [#allocation2], %s974_s17 }
  0x13   : > { %s248_s22 = sshll.u32 %s241_s21, 4  ;;  %p1300_p13 = pnand %p1033_p10, %p1272_p5  ;;  %s1304_s22 = int_to_ptr.vmem [resolvable:$true] %s248_s22 }
  0x14   : > { %s1306_s29 = scalar_lea.sflag [#allocation3], %s237_s15  ;;  %s1085_s8 = scalar_lea.hbm %s1296_s20, 1024 }
  0x15   : > { %p1086_p0 = scmp.ne.s32.totalorder %s1296_s20, %s1085_s8  ;;  %p1087_p1 = pneg %p1300_p13 }
  0x16   : > { %s1090_s16 = scalar_lea.hbm %s1501_s0, 2048  ;;  %p1091_p4 = scmp.lt.u32.totalorder %s1296_s20, %s1501_s0 }
  0x17   : > { %p1088_p2 = pnand %p1087_p1, %p1086_p0  ;;  %p1092_p5 = scmp.lt.u32.totalorder %s1090_s16, %s1085_s8 }
  0x18   : > { %p1094_p8 = scmp.lt.u32.totalorder %s1085_s8, %s1296_s20 }
  0x19   : > { %p1089_p3 = pneg %p1088_p2  ;;  %p1093_p7 = por %p1092_p5, %p1091_p4 }
  0x1b   : > { %p1095_p10 = por %p1094_p8, %p1093_p7 }
  0x1d   : > { %p1096_p9 = pnand %p1095_p10, %p1089_p3 }
  0x1f   : > { %1099 = shalt.err (!%p1096_p9)
}
  0x20   : > { %s1100_s15 = scalar_lea.vmem %s1304_s22, 1024  ;;  %s1183_s19 = smov [#allocation2]  }
  0x21   : > { %p1101_p0 = scmp.ne.s32.totalorder %s1304_s22, %s1100_s15  ;;  %s1105_s21 = sshll.u32 %s1183_s19, 4  ;;  %s1106_s21 = int_to_ptr.vmem [resolvable:$false] %s1105_s21 }
  0x22   : > { %s1107_s9 = scalar_lea.vmem %s1106_s21, 2048  ;;  %p1108_p11 = scmp.lt.s32.totalorder %s1304_s22, %s1106_s21 }
  0x23   : > { %p1103_p2 = pnand %p1101_p0, %p1087_p1  ;;  %p1109_p4 = scmp.lt.s32.totalorder %s1107_s9, %s1100_s15 }
  0x25   : > { %p1104_p12 = pneg %p1103_p2  ;;  %p1110_p5 = por %p1109_p4, %p1108_p11 }
  0x27   : > { %p1111_p7 = pnand %p1110_p5, %p1104_p12 }
  0x29   : > { %1114 = shalt.err (!%p1111_p7)
}
  0x2a   : > { %s1184_s8 = smov 128   ;;  %s1185_s11 = smov 8  }
  0x2b   : > { %1028 = dma.hbm_to_vmem [thread:$0]  (!%p1300_p13), %s1296_s20, 1024, %s1304_s22, %s1306_s29, %s1184_s8, %s1184_s8, %s1185_s11  }
  0x2c   : > { %p977_p9 = scmp.ge.s32.totalorder %s1181_s27, 1  ;;  %p256_p1 = scmp.lt.s32.totalorder %s1181_s27, 3 }
  0x2e   : > { %p257_p3 = pnand %p977_p9, %p256_p1 }
  0x2f   : > { %s1337_s16 = sand.u32 (!%p257_p3), 1, %s1173_s25  }
  0x30   : > { %260 = sbr.rel (%p257_p3) target bundleno = 846 (0x34e), region = 48  ;;  %s978_s17 = sshll.u32 (!%p257_p3), %s1337_s16, 6 }
  0x31   : > { %s263_s18 = scalar_lea.sflag (!%p257_p3), [#allocation3], %s1337_s16  ;;  %s266_s15 = scalar_lea.vmem (!%p257_p3), [#allocation2], %s978_s17 }
  0x37   : > { %1160 = dma.done.wait (%p1276_p6), %s263_s18, 1024  }
  0x38   : > { %1162 = vsyncadd (%p1276_p6), %s263_s18, 4294966272  ;;  %vm305_vm0 = vcmask 130048   ;;  %v1347_v0 = vld [vmem:[%s266_s15 + $0x10] sm:$0xff]  ;;  %v1349_v1 = vld [vmem:[%s266_s15] sm:$0xff]  ;;  %vm430_vm1 = vcmask 1041409   ;;  %vm432_vm2 = vcmask 1042434   ;;  %v390_v55 = vlaneseq }
  0x39   : > { %v1351_v2 = vld [vmem:[%s266_s15 + $0x18] sm:$0xff]  ;;  %v312_v3 = vsel %vm305_vm0, %v1347_v0, 0.0  ;;  %v306_v4 = vsel %vm305_vm0, %v1349_v1, 0.0  ;;  %v1359_v6 = vld [vmem:[%s266_s15 + $0x8] sm:$0xff]  ;;  %v1363_v8 = vld [vmem:[%s266_s15 + $0x20] sm:$0xff]  ;;  %vm434_vm3 = vcmask 1043459  }
  0x3a   : > { %v315_v5 = vsel %vm305_vm0, %v1351_v2, 0.0  ;;  %v1361_v7 = vld [vmem:[%s266_s15 + $0x28] sm:$0xff]  ;;  %313 = vadd.xlane.f32.xlu1 %v312_v3  ;;  %307 = vadd.xlane.f32.xlu0 %v306_v4  ;;  %v309_v10 = vsel %vm305_vm0, %v1359_v6, 0.0  ;;  %v318_v12 = vsel %vm305_vm0, %v1363_v8, 0.0  ;;  %v1371_v13 = vld [vmem:[%s266_s15 + $0x38] sm:$0xff]  ;;  %v1373_v14 = vld [vmem:[%s266_s15 + $0x30] sm:$0xff] }
  0x3b   : > { %v346_v9 = vadd.f32 %v315_v5, %v312_v3  ;;  %v321_v11 = vsel %vm305_vm0, %v1361_v7, 0.0  ;;  %v339_v15 = vadd.f32 %v309_v10, %v306_v4  ;;  %v327_v17 = vsel %vm305_vm0, %v1371_v13, 0.0  ;;  %v371_v52 = vld [vmem:[%s1502_s1] sm:$0xff]  ;;  %s1426_s12 = scalar_lea.vmem [#allocation5], %s978_s17  ;;  %s992_s17 = sshll.u32 %s1254_s28, 10 }
  0x3c   : > { %v353_v16 = vadd.f32 %v321_v11, %v318_v12  ;;  %v324_v18 = vsel %vm305_vm0, %v1373_v14, 0.0  ;;  %v1186_v50 = vmov 0.0   ;;  %vm440_vm4 = vcmask 1043456   ;;  %v372_v53 = vld [vmem:[%s1503_s2] sm:$0xff]  ;;  %s898_s20 = sshll.u32 %s1426_s12, 4  ;;  %s1453_s29 = scalar_lea.hbm %s1508_s7, %s992_s17  ;;  %s1455_s20 = int_to_ptr.vmem [resolvable:$true] %s898_s20 }
  0x3d   : > { %v347_v19 = vrot.slane %v346_v9, 4  ;;  %v360_v20 = vadd.f32 %v327_v17, %v324_v18  ;;  %v340_v21 = vrot.slane %v339_v15, 4  ;;  %1006 = vmatprep.subr.mxu1 %v1186_v50  ;;  %1001 = vmatprep.subr.mxu0 %v1186_v50  ;;  %vm1187_vm5 = vmmov 0   ;;  %s885_s28 = scalar_lea.sflag [#allocation4], %s1337_s16  ;;  %s1115_s19 = scalar_lea.vmem %s1455_s20, 1024 }
  0x3e   : > { %v354_v22 = vrot.slane %v353_v16, 4  ;;  %316 = vadd.xlane.f32.xlu1 %v315_v5  ;;  %310 = vadd.xlane.f32.xlu0 %v309_v10  ;;  %vm436_vm6 = vcmask 31744   ;;  %v1188_v54 = vmov 0   ;;  %v391_v56 = vand.u32 127, %v390_v55  ;;  %p1116_p6 = scmp.ne.s32.totalorder %s1455_s20, %s1115_s19  ;;  %p1515_p11 = scmp.ne.s32.totalorder %s1512_s13, 0 }
  0x3f   : > { %v348_v23 = vadd.f32 %v347_v19, %v346_v9  ;;  %v361_v24 = vrot.slane %v360_v20, 4  ;;  %v341_v25 = vadd.f32 %v340_v21, %v339_v15  ;;  %1008 = vmatprep.mubr.msk.f32.mxu1 %vm1187_vm5, %v1186_v50  ;;  %1003 = vmatprep.mubr.msk.f32.mxu0 %vm1187_vm5, %v1186_v50  ;;  %v1393_v60 = vshrl.u32 %v390_v55, 7  ;;  %s1190_s21 = smov [#allocation5]  }
  0x40   : > { %v355_v26 = vadd.f32 %v354_v22, %v353_v16  ;;  %1075 = vset.pattern.permute.xlu0 %v1188_v54  ;;  %1076 = vset.pattern.permute.xlu1 %v1188_v54  ;;  %v396_v59 = vadd.s32 4294967288, %v391_v56  ;;  %vm401_vm7 = vcmask 130112   ;;  %vm607_vm8 = vcmask 64512   ;;  %p1117_p12 = pnand %p1116_p6, %p1515_p11  ;;  %s1119_s9 = sshll.u32 %s1190_s21, 4  ;;  %s1120_s9 = int_to_ptr.vmem [resolvable:$false] %s1119_s9 }
  0x41   : > { %v349_v27 = vrot.slane %v348_v23, 2  ;;  %v362_v28 = vadd.f32 %v361_v24, %v360_v20  ;;  %v342_v29 = vrot.slane %v341_v25, 2  ;;  %v394_v5 = vsub.s32 %v391_v56, %v1393_v60  ;;  %v373_v56 = vld [vmem:[%s1504_s3] sm:$0xf]  ;;  %s1121_s8 = scalar_lea.vmem %s1120_s9, 2048  ;;  %p1122_p8 = scmp.lt.s32.totalorder %s1455_s20, %s1120_s9 }
  0x42   : > { %v356_v30 = vrot.slane %v355_v26, 2  ;;  %322 = vadd.xlane.f32.xlu1 %v321_v11  ;;  %319 = vadd.xlane.f32.xlu0 %v318_v12  ;;  %v399_v63 = vsub.s32 %v396_v59, %v1393_v60  ;;  %p1118_p13 = pneg %p1117_p12  ;;  %p1123_p10 = scmp.lt.s32.totalorder %s1121_s8, %s1115_s19 }
  0x43   : > { %v350_v31 = vadd.f32 %v349_v27, %v348_v23  ;;  %v363_v32 = vrot.slane %v362_v28, 2  ;;  %v343_v33 = vadd.f32 %v342_v29, %v341_v25 }
  0x44   : > { %v357_v34 = vadd.f32 %v356_v30, %v355_v26  ;;  %p1124_p0 = por %p1123_p10, %p1122_p8 }
  0x45   : > { %v351_v35 = vrot.slane %v350_v31, 1  ;;  %v344_v36 = vrot.slane %v343_v33, 1  ;;  %v364_v38 = vadd.f32 %v363_v32, %v362_v28 }
  0x46   : > { %v358_v37 = vrot.slane %v357_v34, 1  ;;  %328 = vadd.xlane.f32.xlu1 %v327_v17  ;;  %325 = vadd.xlane.f32.xlu0 %v324_v18  ;;  %p1125_p2 = pnand %p1124_p0, %p1118_p13 }
  0x47   : > { %v352_v39 = vadd.f32 %v351_v35, %v350_v31  ;;  %v345_v40 = vadd.f32 %v344_v36, %v343_v33  ;;  %v365_v42 = vrot.slane %v364_v38, 1 }
  0x48   : > { %v359_v41 = vadd.f32 %v358_v37, %v357_v34 }
  0x49   : > { %v368_v43 = vmul.f32 0.0625, %v352_v39  ;;  %v367_v44 = vmul.f32 0.0625, %v345_v40  ;;  %v366_v46 = vadd.f32 %v365_v42, %v364_v38 }
  0x4a   : > { %v369_v45 = vmul.f32 0.0625, %v359_v41 }
  0x4b   : > { %v370_v47 = vmul.f32 0.0625, %v366_v46  ;;  %v522_v48 = vsel %vm430_vm1, %v368_v43, %v367_v44  ;;  %v374_v46 = vld [vmem:[%s1505_s4] sm:$0xf] }
  0x4c   : > { %v523_v49 = vsel %vm432_vm2, %v369_v45, %v522_v48  ;;  %v375_v45 = vld [vmem:[%s1506_s5] sm:$0xf] }
  0x4d   : > { %v524_v51 = vsel %vm434_vm3, %v370_v47, %v523_v49  ;;  %v376_v47 = vld [vmem:[%s1507_s6] sm:$0xf] }
  0x4e   : > { %1007 = vmatpush3.msk.msra.mxu1 %vm440_vm4, %v524_v51 }
  0x4f   : > { %1009 = vmatmul.mubr.msk.f32.vlgmr.msra.gmra.mrb[0].mxu1 %vm436_vm6, %v371_v52  ;;  %1016 = vmatprep.subr.mxu1 %v1186_v50 }
  0x50   : > { %1018 = vmatprep.mubr.msk.f32.mxu1 %vm1187_vm5, %v1186_v50 }
  0x57   : > { %604 = vperm.xlu1 %1076, %v374_v46  }
  0x5b   : > { %689 = vperm.xlu1 %1076, %v376_v47  }
  0x5c   : > { %379 = vperm.xlu0 %1075, %v372_v53  }
  0xc7   : > { %v314_v57 = vpop.xlane.xlu1 %313  ;;  %v308_v58 = vpop.xlane.xlu0 %307 }
  0xc8   : > { %v333_v9 = vmul.f32 0.0625, %v314_v57  ;;  %v331_v10 = vmul.f32 0.0625, %v308_v58 }
  0xca   : > { %v406_v19 = vrot.slane %v333_v9, %v394_v5  ;;  %v395_v20 = vrot.slane %v331_v10, %v394_v5  ;;  %v806_v10 = vsub.s32 3, %v1393_v60 }
  0xcb   : > { %v317_v61 = vpop.xlane.xlu1 %316  ;;  %v311_v62 = vpop.xlane.xlu0 %310 }
  0xcc   : > { %v334_v3 = vmul.f32 0.0625, %v317_v61  ;;  %v332_v4 = vmul.f32 0.0625, %v311_v62 }
  0xce   : > { %v410_v15 = vrot.slane %v334_v3, %v399_v63  ;;  %v400_v16 = vrot.slane %v332_v4, %v399_v63 }
  0xcf   : > { %v323_v11 = vpop.xlane.xlu1 %322  ;;  %v320_v12 = vpop.xlane.xlu0 %319 }
  0xd0   : > { %v336_v17 = vmul.f32 0.0625, %v323_v11  ;;  %v335_v18 = vmul.f32 0.0625, %v320_v12  ;;  %v411_v25 = vsel %vm401_vm7, %v410_v15, %v406_v19  ;;  %v402_v26 = vsel %vm401_vm7, %v400_v16, %v395_v20 }
  0xd1   : > { %v431_v32 = vsel %vm430_vm1, %v411_v25, %v402_v26  ;;  %v773_v11 = vsub.s32 0, %v1393_v60  ;;  %v795_v19 = vsub.s32 2, %v1393_v60 }
  0xd2   : > { %v419_v21 = vrot.slane %v336_v17, %v399_v63  ;;  %v415_v22 = vrot.slane %v335_v18, %v394_v5  ;;  %v784_v17 = vsub.s32 1, %v1393_v60 }
  0xd3   : > { %v329_v23 = vpop.xlane.xlu1 %328  ;;  %v326_v24 = vpop.xlane.xlu0 %325 }
  0xd4   : > { %v338_v27 = vmul.f32 0.0625, %v329_v23  ;;  %v337_v28 = vmul.f32 0.0625, %v326_v24  ;;  %v420_v29 = vsel %vm401_vm7, %v419_v21, %v415_v22 }
  0xd5   : > { %v433_v34 = vsel %vm432_vm2, %v420_v29, %v431_v32 }
  0xd6   : > { %v428_v30 = vrot.slane %v338_v27, %v399_v63  ;;  %v424_v31 = vrot.slane %v337_v28, %v394_v5  ;;  %v1189_v27 = vmov 1966171168  }
  0xd7   : > { %v605_v59 = vpop.permute.xlu1 %604  ;;  %v825_v28 = vunpack.c.l.s4 %v1189_v27 }
  0xd8   : > { %v429_v33 = vsel %vm401_vm7, %v428_v30, %v424_v31 }
  0xd9   : > { %v435_v35 = vsel %vm434_vm3, %v429_v33, %v433_v34  ;;  %v826_v29 = vunpack.c.0.s8 %v825_v28 }
  0xda   : > { %1002 = vmatpush3.msk.msra.mxu0 %vm440_vm4, %v435_v35 }
  0xdb   : > { %1004 = vmatmul.mubr.msk.f32.vlgmr.msra.gmra.mrb[0].mxu0 %vm436_vm6, %v371_v52  ;;  %1011 = vmatprep.subr.mxu0 %v1186_v50  ;;  %v380_v36 = vpop.permute.xlu0 %379  ;;  %v690_v21 = vpop.permute.xlu1 %689  ;;  %v829_v30 = vsub.s32 %v826_v29, %v1393_v60 }
  0xdc   : > { %1013 = vmatprep.mubr.msk.f32.mxu0 %vm1187_vm5, %v1186_v50 }
 0x122   : > { %v593_v37 = vpop.f32.mrb[0].mxu1 }
 0x123   : > { %v594_v38 = vadd.f32 %v593_v37, %v380_v36  ;;  %v1010_v39 = vpop.f32.mrb[1].mxu1 }
 0x125   : > { %v597_v40 = vadd.f32 3.0, %v594_v38 }
 0x127   : > { %v598_v41 = vmax.f32 %v597_v40, 0.0 }
 0x129   : > { %v599_v42 = vmin.f32 %v598_v41, 6.0 }
 0x12b   : > { %v600_v43 = vmul.f32 0.16666667, %v599_v42 }
 0x12d   : > { %v601_v44 = vmul.f32 %v600_v43, %v594_v38 }
 0x12f   : > { %1017 = vmatpush3.msra.mxu1 %v601_v44 }
 0x130   : > { %1019 = vmatmul.mubr.msk.f32.vlgmr.msra.gmra.mrb[2].mxu1 %vm607_vm8, %v375_v45 }
 0x1ae   : > { %v509_v48 = vpop.f32.mrb[0].mxu0 }
 0x1af   : > { %v510_v49 = vadd.f32 %v509_v48, %v380_v36  ;;  %v1005_v50 = vpop.f32.mrb[1].mxu0 }
 0x1b1   : > { %v513_v51 = vadd.f32 3.0, %v510_v49 }
 0x1b3   : > { %v514_v52 = vmax.f32 %v513_v51, 0.0 }
 0x1b5   : > { %v515_v53 = vmin.f32 %v514_v52, 6.0 }
 0x1b7   : > { %v516_v54 = vmul.f32 0.16666667, %v515_v53 }
 0x1b9   : > { %v517_v55 = vmul.f32 %v516_v54, %v510_v49 }
 0x1bb   : > { %1012 = vmatpush3.msra.mxu0 %v517_v55 }
 0x1bc   : > { %1014 = vmatmul.mubr.msk.f32.vlgmr.msra.gmra.mrb[2].mxu0 %vm607_vm8, %v373_v56 }
 0x203   : > { %v761_v57 = vpop.f32.mrb[2].mxu1 }
 0x204   : > { %v1020_v58 = vpop.f32.mrb[3].mxu1  ;;  %v762_v22 = vadd.f32 %v761_v57, %v690_v21 }
 0x206   : > { %v765_v23 = vsub.f32 0.0, %v762_v22 }
 0x208   : > { %v766_v24 = vmul.f32 1.442695, %v765_v23 }
 0x28f   : > { %v677_v61 = vpop.f32.mrb[2].mxu0 }
 0x290   : > { %v678_v62 = vadd.f32 %v677_v61, %v605_v59  ;;  %v1015_v63 = vpop.f32.mrb[3].mxu0 }
 0x292   : > { %v681_v3 = vsub.f32 0.0, %v678_v62 }
 0x294   : > { %v682_v4 = vmul.f32 1.442695, %v681_v3 }
 0x296   : > { %1077 = vpow2.f32 %v682_v4 }
 0x2a0   : > { %v1078_v5 = vpop.eup %1077 }
 0x2a1   : > { %v684_v9 = vadd.f32 1.0, %v1078_v5 }
 0x2a3   : > { %1079 = vrcp.f32 %v684_v9 }
 0x2a4   : > { %1081 = vpow2.f32 %v766_v24 }
 0x2ad   : > { %v1080_v12 = vpop.eup %1079 }
 0x2ae   : > { %v807_v15 = vrot.slane %v1080_v12, %v806_v10  ;;  %v774_v16 = vrot.slane %v1080_v12, %v773_v11  ;;  %v785_v18 = vrot.slane %v1080_v12, %v784_v17  ;;  %v796_v20 = vrot.slane %v1080_v12, %v795_v19  ;;  %v1082_v25 = vpop.eup %1081 }
 0x2af   : > { %v768_v26 = vadd.f32 1.0, %v1082_v25 }
 0x2b0   : > { %809 = vbcast.lane.b32.xlu0 %v807_v15, 256  ;;  %776 = vbcast.lane.b32.xlu1 %v774_v16, 256 }
 0x2b1   : > { %1083 = vrcp.f32 %v768_v26 }
 0x2b4   : > { %780 = vbcast.lane.b32.xlu1 %v774_v16, 264 }
 0x2b8   : > { %787 = vbcast.lane.b32.xlu1 %v785_v18, 256 }
 0x2bb   : > { %v1084_v31 = vpop.eup %1083 }
 0x2bc   : > { %791 = vbcast.lane.b32.xlu1 %v785_v18, 264  ;;  %v830_v32 = vrot.slane %v1084_v31, %v829_v30 }
 0x2be   : > { %v831_v33 = vcombine.high %v830_v32, %v830_v32  ;;  %v838_v36 = vrot.slane %v830_v32, %v829_v30 }
 0x2c0   : > { %798 = vbcast.lane.b32.xlu1 %v796_v20, 256  ;;  %v845_v34 = vrot.slane %v831_v33, %v829_v30  ;;  %v851_v42 = vrot.slane %v838_v36, %v773_v11  ;;  %v846_v51 = vcombine.high %v838_v36, %v838_v36 }
 0x2c2   : > { %v847_v35 = vcombine.high %v845_v34, %v845_v34  ;;  %v855_v47 = vrot.slane %v845_v34, %v773_v11 }
 0x2c4   : > { %802 = vbcast.lane.b32.xlu1 %v796_v20, 264  ;;  %v863_v40 = vrot.slane %v847_v35, %v773_v11 }
 0x2c8   : > { %813 = vbcast.lane.b32.xlu1 %v807_v15, 264 }
 0x322   : > { %v810_v37 = vpop.permute.xlu0 %809  ;;  %v777_v38 = vpop.permute.xlu1 %776 }
 0x323   : > { %v821_v39 = vmul.f32 %v810_v37, %v1373_v14  ;;  %v815_v41 = vmul.f32 %v777_v38, %v1349_v1 }
 0x325   : > { %v874_v43 = vmul.f32 %v863_v40, %v821_v39  ;;  %v868_v44 = vmul.f32 %v851_v42, %v815_v41 }
 0x326   : > { %v781_v45 = vpop.permute.xlu1 %780 }
 0x327   : > { %882 = vst.msk [vmem:[%s1426_s12 + $0x30] sm:$0xff] %vm305_vm0, %v874_v43  ;;  %876 = vst.msk [vmem:[%s1426_s12] sm:$0xff] %vm305_vm0, %v868_v44  ;;  %v816_v14 = vmul.f32 %v781_v45, %v1359_v6 }
 0x329   : > { %v869_v60 = vmul.f32 %v851_v42, %v816_v14 }
 0x32a   : > { %v788_v1 = vpop.permute.xlu1 %787 }
 0x32b   : > { %877 = vst.msk [vmem:[%s1426_s12 + $0x8] sm:$0xff] %vm305_vm0, %v869_v60  ;;  %v817_v46 = vmul.f32 %v788_v1, %v1347_v0  ;;  %v859_v0 = vrot.slane %v846_v51, %v773_v11 }
 0x32d   : > { %v870_v48 = vmul.f32 %v855_v47, %v817_v46 }
 0x32e   : > { %v792_v49 = vpop.permute.xlu1 %791 }
 0x32f   : > { %878 = vst.msk [vmem:[%s1426_s12 + $0x10] sm:$0xff] %vm305_vm0, %v870_v48  ;;  %v818_v50 = vmul.f32 %v792_v49, %v1351_v2 }
 0x331   : > { %v871_v52 = vmul.f32 %v855_v47, %v818_v50 }
 0x332   : > { %v799_v6 = vpop.permute.xlu1 %798 }
 0x333   : > { %879 = vst.msk [vmem:[%s1426_s12 + $0x18] sm:$0xff] %vm305_vm0, %v871_v52  ;;  %v819_v53 = vmul.f32 %v799_v6, %v1363_v8 }
 0x335   : > { %v872_v54 = vmul.f32 %v859_v0, %v819_v53 }
 0x336   : > { %v803_v55 = vpop.permute.xlu1 %802 }
 0x337   : > { %880 = vst.msk [vmem:[%s1426_s12 + $0x20] sm:$0xff] %vm305_vm0, %v872_v54  ;;  %v820_v56 = vmul.f32 %v803_v55, %v1361_v7 }
 0x339   : > { %v873_v57 = vmul.f32 %v859_v0, %v820_v56 }
 0x33a   : > { %v814_v2 = vpop.permute.xlu1 %813 }
 0x33b   : > { %881 = vst.msk [vmem:[%s1426_s12 + $0x28] sm:$0xff] %vm305_vm0, %v873_v57  ;;  %v822_v58 = vmul.f32 %v814_v2, %v1371_v13 }
 0x33d   : > { %v875_v8 = vmul.f32 %v863_v40, %v822_v58 }
 0x33f   : > { %883 = vst.msk [vmem:[%s1426_s12 + $0x38] sm:$0xff] %vm305_vm0, %v875_v8 }
 0x340   : > { %1128 = shalt.err (!%p1125_p2)
}
 0x341   : > { %s1129_s11 = scalar_lea.hbm %s1453_s29, 1024  ;;  %s1133_s12 = scalar_lea.hbm %s1508_s7, 2048 }
 0x342   : > { %p1130_p4 = scmp.ne.s32.totalorder %s1453_s29, %s1129_s11  ;;  %p1134_p9 = scmp.lt.u32.totalorder %s1453_s29, %s1508_s7 }
 0x343   : > { %p1135_p1 = scmp.lt.u32.totalorder %s1133_s12, %s1129_s11  ;;  %p1137_p6 = scmp.lt.u32.totalorder %s1129_s11, %s1453_s29 }
 0x344   : > { %p1131_p5 = pnand %p1130_p4, %p1515_p11 }
 0x345   : > { %p1136_p3 = por %p1135_p1, %p1134_p9 }
 0x346   : > { %p1132_p7 = pneg %p1131_p5 }
 0x347   : > { %p1138_p12 = por %p1137_p6, %p1136_p3 }
 0x349   : > { %p1139_p13 = pnand %p1138_p12, %p1132_p7 }
 0x34b   : > { %1142 = shalt.err (!%p1139_p13)
}
 0x34c   : > { %s1191_s23 = smov 128   ;;  %s1192_s19 = smov 8  }
 0x34d   : > { %1023 = dma.vmem_to_hbm [thread:$0]  (%p1515_p11), %s1455_s20, 1024, %s1453_s29, %s885_s28, %s1191_s23, %s1191_s23, %s1192_s19  }
 0x34e PF: > { %s913_s21 = sand.u32 1, %s1169_s24   ;;  %p1516_p8 = scmp.ne.s32.totalorder %s1513_s14, 0 }
 0x34f   : > { %p1517_p10 = scmp.ge.s32.totalorder %s1181_s27, 2  ;;  %s914_s9 = scalar_lea.sflag [#allocation4], %s913_s21 }
 0x351   : > { %p1030_p0 = pnand %p1517_p10, %p1516_p8 }
 0x353   : > { %1164 = dma.done.wait (!%p1030_p0), %s914_s9, 1024  }
 0x354   : > { %1166 = vsyncadd (!%p1030_p0), %s914_s9, 4294966272  ;;  %p20_p2 = scmp.ge.s32.totalorder %s1258_s30, 4   ;;  %s1518_s24 = smov %s1173_s25 }
 0x355   : > { %s1519_s25 = smov %s1177_s26  ;;  %s1520_s26 = smov %s1270_s10 }
 0x356   : > { %s1521_s27 = smov %s1258_s30  ;;  %22 = sbr.rel (!%p20_p2) target bundleno = 5 (0x5), region = 93 }
 0x35d   :  { %919 = vsyncpa [#allocation3], 1 }
 0x35e   :  { %921 = vsyncpa [#allocation3 + $0x1], 1 }
 0x35f   :  { %922 = vsyncpa [#allocation4], 1 }
 0x360   :  { %924 = vsyncpa [#allocation4 + $0x1], 1 }

</bundles_post_ra>
